<compile_context>
chip_gen: v6e
topology: v6e:2x2x1
jax: 0.10.0
libtpu: 0.0.40
codegen_flags: <defaults>
</compile_context>

<pallas_src>
import functools

import jax
import jax.numpy as jnp
from jax.experimental import pallas as pl
from jax.experimental.pallas import tpu as pltpu


def _round_up(n: int, m: int) -> int:
    return ((n + m - 1) // m) * m


def _pick_tile_rows(n_rows: int, n_cols: int, itemsize: int,
                    target_bytes: int = 8 * 1024 * 1024) -> int:
    """Row tile: full (lane-dense) class axis, ~target_bytes per block, multiple of 8."""
    rows = max(1, target_bytes // max(n_cols * itemsize, 1))
    rows = max(8, (rows // 8) * 8)
    rows = min(rows, 1024)
    rows = min(rows, _round_up(n_rows, 8))
    return rows


def _wce_kernel(x_ref, tl_ref, w_ref, out_ref, wsum_acc, wtot_acc,
                *, tile_rows, n_rows):
    """One row tile: per-row CE = logsumexp(logits) - pre-gathered target logit.

    Accumulates per-row weighted partials in VMEM scratch; reduces + stores once per
    core chunk (last step of the 'arbitrary' axis).
    """
    i = pl.program_id(1)

    @pl.when(i == 0)
    def _init():
        wsum_acc[...] = jnp.zeros_like(wsum_acc)
        wtot_acc[...] = jnp.zeros_like(wtot_acc)

    # Upcast inside the kernel so bf16 inputs are still reduced in f32 (no bf16 VPU on v5e).
    logits = x_ref[...].astype(jnp.float32)            # (TR, V)
    tgt_logit = tl_ref[...]                             # (TR, 1) f32 (gathered outside)
    w = w_ref[...]                                       # (TR, 1) f32

    # Numerically stable log-sum-exp over the class (lane) axis.
    m = jnp.max(logits, axis=-1, keepdims=True)                          # (TR, 1)
    lse = m + jnp.log(jnp.sum(jnp.exp(logits - m), axis=-1, keepdims=True))
    ce = lse - tgt_logit                                                 # (TR, 1)

    # Mask rows past n_rows (ragged last tile / clamped fully-out-of-range steps).
    step = pl.program_id(0) * pl.num_programs(1) + i
    row = step * tile_rows + jax.lax.broadcasted_iota(jnp.int32, (tile_rows, 1), 0)
    valid = row < n_rows
    wsum_acc[...] += jnp.where(valid, ce * w, 0.0)
    wtot_acc[...] += jnp.where(valid, w, 0.0)

    # One cross-sublane reduce + one store per core chunk (not per step).
    @pl.when(i == pl.num_programs(1) - 1)
    def _fin():
        wsum_s = jnp.sum(wsum_acc[...])
        wtot_s = jnp.sum(wtot_acc[...])
        sub = jax.lax.broadcasted_iota(jnp.int32, (8, 128), 0)
        blk = jnp.where(sub == 0, wsum_s, jnp.where(sub == 1, wtot_s, 0.0))
        out_ref[...] = blk.reshape(1, 8, 128)


def _weighted_ce_sums_ref(logits, targets, weights):
    """Plain-JAX path (used for the tiny NSP head, class axis < one lane register)."""
    logits = logits.astype(jnp.float32)
    lse = jax.scipy.special.logsumexp(logits, axis=-1)
    tgt = jnp.take_along_axis(logits, targets[:, None].astype(jnp.int32), axis=-1)[:, 0]
    w = weights.astype(jnp.float32)
    return jnp.sum((lse - tgt) * w), jnp.sum(w)


def _weighted_ce_sums(logits, targets, weights, *, tile_rows=None):
    """Returns (sum_i w_i * CE_i, sum_i w_i) for logits (N, V), targets (N,), weights (N,)."""
    n_rows, n_cols = logits.shape
    if n_cols < 128 or n_rows == 0:
        # Fewer classes than one lane register: XLA inline code beats a kernel launch.
        return _weighted_ce_sums_ref(logits, targets, weights)

    itemsize = logits.dtype.itemsize
    if tile_rows is None:
        tile_rows = _pick_tile_rows(n_rows, n_cols, itemsize)

    n_blocks = pl.cdiv(n_rows, tile_rows)
    num_cores = min(2, n_blocks)                 # v7x: split the reduction across 2 TCs
    steps_per_core = pl.cdiv(n_blocks, num_cores)

    # Pre-gather logits[i, target[i]] outside (reads only N elements of HBM) so the
    # kernel skips the per-element one-hot select entirely.
    tgt = jnp.clip(targets.astype(jnp.int32), 0, n_cols - 1)
    tgt_logit = jnp.take_along_axis(logits, tgt[:, None], axis=-1).astype(jnp.float32)
    weights2 = weights.astype(jnp.float32).reshape(n_rows, 1)

    def in_map(c, i):
        # Clamp so fully-out-of-range steps re-read the last valid block (masked in-kernel).
        return (jnp.minimum(c * steps_per_core + i, n_blocks - 1), 0)

    block_bytes = tile_rows * n_cols * itemsize
    vmem_limit = int(min(64 << 20, max(32 << 20, 3 * block_bytes)))

    kernel = functools.partial(_wce_kernel, tile_rows=tile_rows, n_rows=n_rows)

    out = pl.pallas_call(
        kernel,
        out_shape=jax.ShapeDtypeStruct((num_cores, 8, 128), jnp.float32),
        grid_spec=pltpu.PrefetchScalarGridSpec(
            num_scalar_prefetch=0,
            grid=(num_cores, steps_per_core),
            in_specs=[
                pl.BlockSpec((tile_rows, n_cols), in_map),   # logits row tile
                pl.BlockSpec((tile_rows, 1), in_map),        # pre-gathered target logits
                pl.BlockSpec((tile_rows, 1), in_map),        # weights
            ],
            out_specs=pl.BlockSpec((1, 8, 128), lambda c, i: (c, 0, 0)),
            scratch_shapes=[
                pltpu.VMEM((tile_rows, 1), jnp.float32),     # per-row weighted-CE partials
                pltpu.VMEM((tile_rows, 1), jnp.float32),     # per-row weight partials
            ],
        ),
        compiler_params=pltpu.CompilerParams(
            dimension_semantics=("parallel", "arbitrary"),
            vmem_limit_bytes=vmem_limit,
        ),
        cost_estimate=pl.CostEstimate(
            flops=5 * n_rows * n_cols,
            transcendentals=n_rows * n_cols,
            bytes_accessed=n_rows * n_cols * itemsize + n_rows * 8
                           + num_cores * 8 * 128 * 4,
        ),
    )(logits, tgt_logit, weights2)

    # Per-core partials: row 0 carries the weighted CE sum, row 1 the weight sum.
    wsum = jnp.sum(out[:, 0, 0])
    wtot = jnp.sum(out[:, 1, 0])
    return wsum, wtot


def bert_loss(nsp_Y_hat, nsp_Y, mlm_Y_hat, mlm_Y, mlm_weights):
    """Matches BERTLoss.forward: (all_loss, nsp_loss, mlm_loss)."""
    batch = nsp_Y_hat.shape[0]
    vocab = mlm_Y_hat.shape[-1]

    # NSP: CrossEntropyLoss(reduction='none')(...).mean(). Only 2 classes -> plain-JAX path.
    nsp_wsum, nsp_cnt = _weighted_ce_sums(
        nsp_Y_hat, nsp_Y, jnp.ones((batch,), jnp.float32))

    # MLM: (CE(flat logits, flat targets) * flat weights).sum() / weights.sum() -> Pallas.
    mlm_wsum, mlm_wtot = _weighted_ce_sums(
        mlm_Y_hat.reshape(-1, vocab), mlm_Y.reshape(-1), mlm_weights.reshape(-1))

    nsp_loss = nsp_wsum / nsp_cnt
    # NOTE: mlm_weights summing to 0 yields NaN, identical to the reference PyTorch module.
    mlm_loss = mlm_wsum / mlm_wtot
    all_loss = nsp_loss + mlm_loss
    return all_loss, nsp_loss, mlm_loss


def _ce_ref(logits, targets):
    """Pure-JAX reference: per-row cross entropy (PyTorch CrossEntropyLoss reduction='none')."""
    lse = jax.scipy.special.logsumexp(logits.astype(jnp.float32), axis=-1)
    tgt = jnp.take_along_axis(logits.astype(jnp.float32),
                              targets[:, None].astype(jnp.int32), axis=-1)[:, 0]
    return lse - tgt


if __name__ == "__main__":
    batch, num_pred, vocab = 2, 8, 128

    key = jax.random.PRNGKey(0)
    k1, k2, k3, k4 = jax.random.split(key, 4)
    nsp_Y_hat = jax.random.normal(k1, (batch, 2), dtype=jnp.float32)
    nsp_Y = jax.random.randint(k2, (batch,), 0, 2, dtype=jnp.int32)
    mlm_Y_hat = jax.random.normal(k3, (batch, num_pred, vocab), dtype=jnp.float32)
    mlm_Y = jax.random.randint(k4, (batch, num_pred), 0, vocab, dtype=jnp.int32)
    mlm_weights = jnp.array([[1, 1, 1, 1, 1, 0, 0, 0],
                             [1, 1, 1, 0, 0, 0, 0, 0]], dtype=jnp.float32)

    all_loss, nsp_loss, mlm_loss = jax.jit(bert_loss)(
        nsp_Y_hat, nsp_Y, mlm_Y_hat, mlm_Y, mlm_weights)
    all_loss = jax.block_until_ready(all_loss)

    # Pure-JAX reference of the PyTorch module.
    nsp_ref = _ce_ref(nsp_Y_hat, nsp_Y).mean()
    mlm_ce = _ce_ref(mlm_Y_hat.reshape(-1, vocab), mlm_Y.reshape(-1))
    mlm_ref = (mlm_ce * mlm_weights.reshape(-1)).sum() / mlm_weights.sum()
    all_ref = nsp_ref + mlm_ref

    assert jnp.isfinite(all_loss)
    assert jnp.allclose(nsp_loss, nsp_ref, atol=1e-5, rtol=1e-5), (nsp_loss, nsp_ref)
    assert jnp.allclose(mlm_loss, mlm_ref, atol=1e-5, rtol=1e-5), (mlm_loss, mlm_ref)
    assert jnp.allclose(all_loss, all_ref, atol=1e-5, rtol=1e-5), (all_loss, all_ref)

    # Extra check: multi-step grid, 2-core split, and ragged last-tile masking.
    kr = jax.random.split(key, 3)
    n_rows2, vocab2 = 37, 256
    logits2 = jax.random.normal(kr[0], (n_rows2, vocab2), dtype=jnp.float32)
    tgts2 = jax.random.randint(kr[1], (n_rows2,), 0, vocab2, dtype=jnp.int32)
    w2 = jax.random.uniform(kr[2], (n_rows2,), dtype=jnp.float32)
    ws, wt = _weighted_ce_sums(logits2, tgts2, w2, tile_rows=16)
    ws = jax.block_until_ready(ws)
    ce2 = _ce_ref(logits2, tgts2)
    assert jnp.allclose(ws, jnp.sum(ce2 * w2), atol=1e-4, rtol=1e-5), (ws, jnp.sum(ce2 * w2))
    assert jnp.allclose(wt, jnp.sum(w2), atol=1e-5, rtol=1e-5), (wt, jnp.sum(w2))

    print("KERNEL_OK")
</pallas_src>

<mosaic_0001>
module attributes {stable_mosaic.version = 11 : i64} {
  func.func @_wce_kernel(%arg0: i32, %arg1: i32, %arg2: memref<16x128xf32, #tpu.memory_space<vmem>>, %arg3: memref<16x1xf32, #tpu.memory_space<vmem>>, %arg4: memref<16x1xf32, #tpu.memory_space<vmem>>, %arg5: memref<1x8x128xf32, #tpu.memory_space<vmem>>, %arg6: memref<16x1xf32, #tpu.memory_space<vmem>>, %arg7: memref<16x1xf32, #tpu.memory_space<vmem>>) attributes {dimension_semantics = [#tpu.dimension_semantics<parallel>, #tpu.dimension_semantics<arbitrary>], iteration_bounds = array<i64: 1, 1>, scalar_prefetch = 0 : i64, scratch_operands = 2 : i64, tpu.core_type = #tpu.core_type<tc>, window_params = [{transform_indices = @transform_0, window_bounds = array<i64: 16, 128>}, {transform_indices = @transform_1, window_bounds = array<i64: 16, 1>}, {transform_indices = @transform_2, window_bounds = array<i64: 16, 1>}, {transform_indices = @transform_3, window_bounds = array<i64: 1, 8, 128>}]} {
    %c0_i32 = arith.constant 0 : i32
    %0 = arith.cmpi eq, %arg1, %c0_i32 : i32
    %1 = arith.extui %0 : i1 to i32
    %c0_i32_0 = arith.constant 0 : i32
    %2 = arith.cmpi ne, %1, %c0_i32_0 : i32
    scf.if %2 {
      %cst_20 = arith.constant 0.000000e+00 : f32
      %38 = vector.broadcast %cst_20 : f32 to vector<16x1xf32>
      %c0_21 = arith.constant 0 : index
      %c0_22 = arith.constant 0 : index
      %39 = vector.load %arg6[%c0_21, %c0_22] : memref<16x1xf32, #tpu.memory_space<vmem>>, vector<16x1xf32>
      tpu.vector_store %arg6[%c0_21, %c0_22], %38 {strides = array<i32>} : memref<16x1xf32, #tpu.memory_space<vmem>>, vector<16x1xf32>,
      %cst_23 = arith.constant 0.000000e+00 : f32
      %40 = vector.broadcast %cst_23 : f32 to vector<16x1xf32>
      %c0_24 = arith.constant 0 : index
      %c0_25 = arith.constant 0 : index
      %41 = vector.load %arg7[%c0_24, %c0_25] : memref<16x1xf32, #tpu.memory_space<vmem>>, vector<16x1xf32>
      tpu.vector_store %arg7[%c0_24, %c0_25], %40 {strides = array<i32>} : memref<16x1xf32, #tpu.memory_space<vmem>>, vector<16x1xf32>,
    } else {
    }
    %c0 = arith.constant 0 : index
    %c0_1 = arith.constant 0 : index
    %3 = vector.load %arg2[%c0, %c0_1] : memref<16x128xf32, #tpu.memory_space<vmem>>, vector<16x128xf32>
    %c0_2 = arith.constant 0 : index
    %c0_3 = arith.constant 0 : index
    %4 = vector.load %arg3[%c0_2, %c0_3] : memref<16x1xf32, #tpu.memory_space<vmem>>, vector<16x1xf32>
    %c0_4 = arith.constant 0 : index
    %c0_5 = arith.constant 0 : index
    %5 = vector.load %arg4[%c0_4, %c0_5] : memref<16x1xf32, #tpu.memory_space<vmem>>, vector<16x1xf32>
    %cst = arith.constant dense<0xFF800000> : vector<16xf32>
    %6 = vector.multi_reduction <maximumf>, %3, %cst [1] : vector<16x128xf32> to vector<16xf32>
    %7 = vector.shape_cast %6 : vector<16xf32> to vector<16x1xf32>
    %8 = vector.broadcast %7 : vector<16x1xf32> to vector<16x128xf32>
    %9 = arith.subf %3, %8 : vector<16x128xf32>
    %10 = math.exp %9 : vector<16x128xf32>
    %cst_6 = arith.constant dense<0.000000e+00> : vector<16xf32>
    %11 = vector.multi_reduction <add>, %10, %cst_6 [1] : vector<16x128xf32> to vector<16xf32>
    %12 = vector.shape_cast %11 : vector<16xf32> to vector<16x1xf32>
    %13 = math.log %12 : vector<16x1xf32>
    %14 = arith.addf %7, %13 : vector<16x1xf32>
    %15 = arith.subf %14, %4 : vector<16x1xf32>
    %c1_i32 = arith.constant 1 : i32
    %16 = arith.muli %arg0, %c1_i32 : i32
    %17 = arith.addi %16, %arg1 : i32
    %c16_i32 = arith.constant 16 : i32
    %18 = arith.muli %17, %c16_i32 : i32
    %19 = tpu.iota {dimensions = array<i32: 0>} : vector<16x1xi32>
    %20 = vector.broadcast %18 : i32 to vector<16x1xi32>
    %21 = arith.addi %20, %19 : vector<16x1xi32>
    %c16_i32_7 = arith.constant 16 : i32
    %22 = vector.broadcast %c16_i32_7 : i32 to vector<16x1xi32>
    %23 = arith.cmpi slt, %21, %22 : vector<16x1xi32>
    %c0_8 = arith.constant 0 : index
    %c0_9 = arith.constant 0 : index
    %24 = vector.load %arg6[%c0_8, %c0_9] : memref<16x1xf32, #tpu.memory_space<vmem>>, vector<16x1xf32>
    %25 = arith.mulf %15, %5 : vector<16x1xf32>
    %cst_10 = arith.constant 0.000000e+00 : f32
    %26 = vector.broadcast %cst_10 : f32 to vector<16x1xf32>
    %27 = arith.select %23, %25, %26 : vector<16x1xi1>, vector<16x1xf32>
    %28 = arith.addf %24, %27 : vector<16x1xf32>
    %c0_11 = arith.constant 0 : index
    %c0_12 = arith.constant 0 : index
    %29 = vector.load %arg6[%c0_11, %c0_12] : memref<16x1xf32, #tpu.memory_space<vmem>>, vector<16x1xf32>
    tpu.vector_store %arg6[%c0_11, %c0_12], %28 {strides = array<i32>} : memref<16x1xf32, #tpu.memory_space<vmem>>, vector<16x1xf32>,
    %c0_13 = arith.constant 0 : index
    %c0_14 = arith.constant 0 : index
    %30 = vector.load %arg7[%c0_13, %c0_14] : memref<16x1xf32, #tpu.memory_space<vmem>>, vector<16x1xf32>
    %cst_15 = arith.constant 0.000000e+00 : f32
    %31 = vector.broadcast %cst_15 : f32 to vector<16x1xf32>
    %32 = arith.select %23, %5, %31 : vector<16x1xi1>, vector<16x1xf32>
    %33 = arith.addf %30, %32 : vector<16x1xf32>
    %c0_16 = arith.constant 0 : index
    %c0_17 = arith.constant 0 : index
    %34 = vector.load %arg7[%c0_16, %c0_17] : memref<16x1xf32, #tpu.memory_space<vmem>>, vector<16x1xf32>
    tpu.vector_store %arg7[%c0_16, %c0_17], %33 {strides = array<i32>} : memref<16x1xf32, #tpu.memory_space<vmem>>, vector<16x1xf32>,
    %c0_i32_18 = arith.constant 0 : i32
    %35 = arith.cmpi eq, %arg1, %c0_i32_18 : i32
    %36 = arith.extui %35 : i1 to i32
    %c0_i32_19 = arith.constant 0 : i32
    %37 = arith.cmpi ne, %36, %c0_i32_19 : i32
    scf.if %37 {
      %c0_20 = arith.constant 0 : index
      %c0_21 = arith.constant 0 : index
      %38 = vector.load %arg6[%c0_20, %c0_21] : memref<16x1xf32, #tpu.memory_space<vmem>>, vector<16x1xf32>
      %39 = vector.shape_cast %38 : vector<16x1xf32> to vector<1x16x1xf32>
      %cst_22 = arith.constant dense<0.000000e+00> : vector<1xf32>
      %40 = vector.multi_reduction <add>, %39, %cst_22 [1, 2] : vector<1x16x1xf32> to vector<1xf32>
      %41 = vector.shape_cast %40 : vector<1xf32> to vector<1x1x1xf32>
      %42 = vector.extract %41[0, 0, 0] : f32 from vector<1x1x1xf32>
      %c0_23 = arith.constant 0 : index
      %c0_24 = arith.constant 0 : index
      %43 = vector.load %arg7[%c0_23, %c0_24] : memref<16x1xf32, #tpu.memory_space<vmem>>, vector<16x1xf32>
      %44 = vector.shape_cast %43 : vector<16x1xf32> to vector<1x16x1xf32>
      %cst_25 = arith.constant dense<0.000000e+00> : vector<1xf32>
      %45 = vector.multi_reduction <add>, %44, %cst_25 [1, 2] : vector<1x16x1xf32> to vector<1xf32>
      %46 = vector.shape_cast %45 : vector<1xf32> to vector<1x1x1xf32>
      %47 = vector.extract %46[0, 0, 0] : f32 from vector<1x1x1xf32>
      %48 = tpu.iota {dimensions = array<i32: 0>} : vector<8x128xi32>
      %c0_i32_26 = arith.constant 0 : i32
      %49 = vector.broadcast %c0_i32_26 : i32 to vector<8x128xi32>
      %50 = arith.cmpi eq, %48, %49 : vector<8x128xi32>
      %c1_i32_27 = arith.constant 1 : i32
      %51 = vector.broadcast %c1_i32_27 : i32 to vector<8x128xi32>
      %52 = arith.cmpi eq, %48, %51 : vector<8x128xi32>
      %cst_28 = arith.constant 0.000000e+00 : f32
      %53 = vector.broadcast %47 : f32 to vector<8x128xf32>
      %54 = vector.broadcast %cst_28 : f32 to vector<8x128xf32>
      %55 = arith.select %52, %53, %54 : vector<8x128xi1>, vector<8x128xf32>
      %56 = vector.broadcast %42 : f32 to vector<8x128xf32>
      %57 = arith.select %50, %56, %55 : vector<8x128xi1>, vector<8x128xf32>
      %58 = vector.shape_cast %57 : vector<8x128xf32> to vector<1x8x128xf32>
      %c0_29 = arith.constant 0 : index
      %c0_30 = arith.constant 0 : index
      %c0_31 = arith.constant 0 : index
      %59 = vector.load %arg5[%c0_29, %c0_30, %c0_31] : memref<1x8x128xf32, #tpu.memory_space<vmem>>, vector<1x8x128xf32>
      tpu.vector_store %arg5[%c0_29, %c0_30, %c0_31], %58 {strides = array<i32>} : memref<1x8x128xf32, #tpu.memory_space<vmem>>, vector<1x8x128xf32>,
    } else {
    }
    return
  }
  func.func @transform_0(%arg0: i32, %arg1: i32) -> (i32, i32) {
    %c1_i32 = arith.constant 1 : i32
    %0 = arith.muli %arg0, %c1_i32 : i32
    %1 = arith.addi %0, %arg1 : i32
    %c0_i32 = arith.constant 0 : i32
    %2 = arith.minsi %1, %c0_i32 : i32
    %c0_i32_0 = arith.constant 0 : i32
    %c0_i32_1 = arith.constant 0 : i32
    return %2, %c0_i32_0 : i32, i32
  }
  func.func @transform_1(%arg0: i32, %arg1: i32) -> (i32, i32) {
    %c1_i32 = arith.constant 1 : i32
    %0 = arith.muli %arg0, %c1_i32 : i32
    %1 = arith.addi %0, %arg1 : i32
    %c0_i32 = arith.constant 0 : i32
    %2 = arith.minsi %1, %c0_i32 : i32
    %c0_i32_0 = arith.constant 0 : i32
    %c0_i32_1 = arith.constant 0 : i32
    return %2, %c0_i32_0 : i32, i32
  }
  func.func @transform_2(%arg0: i32, %arg1: i32) -> (i32, i32) {
    %c1_i32 = arith.constant 1 : i32
    %0 = arith.muli %arg0, %c1_i32 : i32
    %1 = arith.addi %0, %arg1 : i32
    %c0_i32 = arith.constant 0 : i32
    %2 = arith.minsi %1, %c0_i32 : i32
    %c0_i32_0 = arith.constant 0 : i32
    %c0_i32_1 = arith.constant 0 : i32
    return %2, %c0_i32_0 : i32, i32
  }
  func.func @transform_3(%arg0: i32, %arg1: i32) -> (i32, i32, i32) {
    %c0_i32 = arith.constant 0 : i32
    %c0_i32_0 = arith.constant 0 : i32
    %c0_i32_1 = arith.constant 0 : i32
    return %arg0, %c0_i32, %c0_i32_0 : i32, i32, i32
  }
}

</mosaic_0001>

<bundles_post_ra>
// kernel: bert_loss.1
= control target key start
LH: loop header
LB: loop body
LE: loop exit
PB: predicated region body
PF: predicated region fallthrough
CT: control target
= control target key end

     0   :  { %vm114_vm0 = vcmask 7168   ;;  %v249_v2 = vmov 0.0   ;;  %v149_v59 = vlaneseq  ;;  %s303_s0 = inlined_call_operand.vmem [shape: f32[16,128], index: 0, kind: input, shape index: {}]   ;;  %s304_s2 = inlined_call_operand.vmem [shape: f32[16,1], index: 2, kind: input, shape index: {}]   ;;  %s305_s1 = inlined_call_operand.vmem [shape: f32[16,1], index: 1, kind: input, shape index: {}]   ;;  %s306_s3 = inlined_call_operand.vmem [shape: f32[1,8,128], index: 3, kind: output, shape index: {}]  }
   0x1   :  { %v119_v0 = vld [vmem:[%s303_s0] sm:$0xff]  ;;  %v120_v1 = vld [vmem:[%s303_s0 + $0x8] sm:$0xff]  ;;  %115 = vst.msk [vmem:[#allocation2] sm:$0xff] %vm114_vm0, %v249_v2  ;;  %117 = vst.msk [vmem:[#allocation3] sm:$0xff] %vm114_vm0, %v249_v2 }
   0x2   :  { %125 = vmax.xlane.f32.xlu0 %v119_v0  ;;  %116 = vst.msk [vmem:[#allocation2 + $0x8] sm:$0xff] %vm114_vm0, %v249_v2  ;;  %118 = vst.msk [vmem:[#allocation3 + $0x8] sm:$0xff] %vm114_vm0, %v249_v2  ;;  %v123_v3 = vld [vmem:[%s304_s2] sm:$0xff]  ;;  %v124_v14 = vld [vmem:[%s304_s2 + $0x8] sm:$0xff]  ;;  %v150_v60 = vshrl.u32 %v149_v59, 7 }
   0x3   :  { %v121_v26 = vld [vmem:[%s305_s1] sm:$0xff]  ;;  %v122_v32 = vld [vmem:[%s305_s1 + $0x8] sm:$0xff] }
   0x4   :  { %vm208_vm1 = vcmp.eq.s32.totalorder %v150_v60, 1  ;;  %vm207_vm2 = vcmp.eq.s32.totalorder %v150_v60, 0 }
   0x6   :  { %127 = vmax.xlane.f32.xlu0 %v120_v1 }
   0x8   :  { %v168_v4 = vld [vmem:[#allocation3] sm:$0xff]  ;;  %v157_v31 = vld [vmem:[#allocation2] sm:$0xff] }
   0x9   :  { %v172_v5 = vadd.f32 %v168_v4, %v123_v3  ;;  %v169_v15 = vld [vmem:[#allocation3 + $0x8] sm:$0xff]  ;;  %v158_v37 = vld [vmem:[#allocation2 + $0x8] sm:$0xff] }
   0xa   :  { %v173_v16 = vadd.f32 %v169_v15, %v124_v14 }
   0xb   :  { %174 = vst.msk [vmem:[#allocation3] sm:$0xff] %vm114_vm0, %v172_v5 }
   0xc   :  { %175 = vst.msk [vmem:[#allocation3 + $0x8] sm:$0xff] %vm114_vm0, %v173_v16 }
  0x12   :  { %v193_v17 = vld [vmem:[#allocation3] sm:$0xff] }
  0x13   :  { %v194_v18 = vld [vmem:[#allocation3 + $0x8] sm:$0xff]  ;;  %v195_v19 = vsel %vm114_vm0, %v193_v17, 0.0 }
  0x14   :  { %v196_v20 = vsel %vm114_vm0, %v194_v18, 0.0 }
  0x15   :  { %v197_v21 = vadd.f32 %v196_v20, %v195_v19 }
  0x8b   :  { %v126_v6 = vpop.xlane.xlu0 %125 }
  0x8c   :  { %v129_v7 = vsub.f32 %v119_v0, %v126_v6 }
  0x8e   :  { %v131_v8 = vmul.f32 1.442695, %v129_v7 }
  0x8f   :  { %v128_v9 = vpop.xlane.xlu0 %127 }
  0x90   :  { %241 = vpow2.f32 %v131_v8  ;;  %v130_v10 = vsub.f32 %v120_v1, %v128_v9 }
  0x92   :  { %v133_v11 = vmul.f32 1.442695, %v130_v10 }
  0x94   :  { %243 = vpow2.f32 %v133_v11 }
  0x9d   :  { %v242_v12 = vpop.eup %241 }
  0x9e   :  { %135 = vadd.xlane.f32.xlu1 %v242_v12 }
  0xa1   :  { %v244_v13 = vpop.eup %243 }
  0xa2   :  { %137 = vadd.xlane.f32.xlu1 %v244_v13 }
  0xa6   :  { %198 = vadd.xlane.f32.xlu1 %v197_v21 }
 0x127   :  { %v136_v22 = vpop.xlane.xlu1 %135 }
 0x128   :  { %245 = vlog2.f32 %v136_v22 }
 0x12b   :  { %v138_v23 = vpop.xlane.xlu1 %137 }
 0x12c   :  { %247 = vlog2.f32 %v138_v23 }
 0x12f   :  { %v199_v45 = vpop.xlane.xlu1 %198 }
 0x130   :  { %v200_v46 = vrot.slane %v199_v45, 4 }
 0x132   :  { %v201_v47 = vadd.f32 %v200_v46, %v199_v45 }
 0x134   :  { %v202_v48 = vrot.slane %v201_v47, 2 }
 0x135   :  { %v246_v24 = vpop.eup %245 }
 0x136   :  { %v140_v25 = vmul.f32 0.6931472, %v246_v24  ;;  %v203_v52 = vadd.f32 %v202_v48, %v201_v47 }
 0x138   :  { %v143_v27 = vadd.f32 %v140_v25, %v126_v6  ;;  %v204_v55 = vrot.slane %v203_v52, 1 }
 0x139   :  { %v248_v28 = vpop.eup %247 }
 0x13a   :  { %v145_v29 = vsub.f32 %v143_v27, %v121_v26  ;;  %v142_v30 = vmul.f32 0.6931472, %v248_v28  ;;  %v205_v58 = vadd.f32 %v204_v55, %v203_v52 }
 0x13c   :  { %v159_v33 = vmul.f32 %v145_v29, %v123_v3  ;;  %v144_v34 = vadd.f32 %v142_v30, %v128_v9 }
 0x13e   :  { %v163_v35 = vadd.f32 %v159_v33, %v157_v31  ;;  %v146_v36 = vsub.f32 %v144_v34, %v122_v32 }
 0x140   :  { %166 = vst.msk [vmem:[#allocation2] sm:$0xff] %vm114_vm0, %v163_v35  ;;  %v160_v38 = vmul.f32 %v146_v36, %v124_v14 }
 0x142   :  { %v164_v39 = vadd.f32 %v160_v38, %v158_v37 }
 0x144   :  { %167 = vst.msk [vmem:[#allocation2 + $0x8] sm:$0xff] %vm114_vm0, %v164_v39 }
 0x147   :  { %v179_v40 = vld [vmem:[#allocation2] sm:$0xff] }
 0x148   :  { %v181_v42 = vsel %vm114_vm0, %v179_v40, 0.0 }
 0x14b   :  { %v180_v41 = vld [vmem:[#allocation2 + $0x8] sm:$0xff] }
 0x14c   :  { %v182_v43 = vsel %vm114_vm0, %v180_v41, 0.0 }
 0x14d   :  { %v183_v44 = vadd.f32 %v182_v43, %v181_v42 }
 0x14f   :  { %184 = vadd.xlane.f32.xlu0 %v183_v44 }
 0x1d8   :  { %v185_v49 = vpop.xlane.xlu0 %184 }
 0x1d9   :  { %v186_v50 = vrot.slane %v185_v49, 4 }
 0x1db   :  { %v187_v51 = vadd.f32 %v186_v50, %v185_v49 }
 0x1dd   :  { %v188_v53 = vrot.slane %v187_v51, 2 }
 0x1df   :  { %v189_v54 = vadd.f32 %v188_v53, %v187_v51 }
 0x1e1   :  { %v190_v56 = vrot.slane %v189_v54, 1 }
 0x1e3   :  { %v191_v57 = vadd.f32 %v190_v56, %v189_v54 }
 0x1e5   :  { %236 = vpush %v191_v57 }
 0x1e6   :  { %238 = vpush %v205_v58 }
 0x216   :  { %s237_s1 = spop %236 }
 0x217   :  { %v211_v61 = vstv %s237_s1  ;;  %s239_s22 = spop %238 }
 0x218   :  { %v209_v62 = vstv %s239_s22 }
 0x219   :  { %v210_v63 = vsel %vm208_vm1, %v209_v62, 0.0 }
 0x21a   :  { %v212_v0 = vsel %vm207_vm2, %v211_v61, %v210_v63 }
 0x21b   :  { %213 = vst [vmem:[%s306_s3] sm:$0xff] %v212_v0 }

</bundles_post_ra>
